<compile_context>
chip_gen: v5e
topology: v5e:2x2
jax: 0.10.0
libtpu: 0.0.40
codegen_flags: <defaults>
</compile_context>

<pallas_src>
import jax
import jax.numpy as jnp
from jax.experimental import pallas as pl
from jax.experimental.pallas import tpu as pltpu

ALPHA = 1.0
GAMMA = 3  # integer exponent -> explicit cube inside the kernel

LANES = 128
SUBLANES = 8
MAX_TILE_ROWS = 4096            # 4096*128*4B = 2 MiB per f32 input tile
VMEM_LIMIT = 32 * 1024 * 1024   # headroom; <= every generation's physical VMEM


def _round_up(x, m):
    return (x + m - 1) // m * m


def _num_partials():
    """Leading 'parallel' partials: one per TensorCore (2 on v7x, else 1)."""
    try:
        kind = jax.devices()[0].device_kind.lower()
    except Exception:
        return 1
    return 2 if "v7" in kind else 1


def _focal_elementwise(x, t):
    """Stable BCE-with-logits (reduction='none') + focal modulation, in f32."""
    x = x.astype(jnp.float32)
    t = t.astype(jnp.float32)
    # bce = max(x, 0) - x*t + log(1 + exp(-|x|))
    bce = jnp.maximum(x, 0.0) - x * t + jnp.log1p(jnp.exp(-jnp.abs(x)))
    pt = jnp.exp(-bce)
    one_m_pt = 1.0 - pt
    # explicit cube: no pow (log+exp) on the EUP, no NaN for pt ~ 1
    return ALPHA * (one_m_pt * one_m_pt * one_m_pt) * bce


def _make_sum_kernel(n_valid, tile_rows, steps):
    """Reduction kernel: per-partial (8, 128) running sums."""
    q_rows = n_valid // LANES   # number of fully-valid rows (static)
    rem = n_valid % LANES       # valid lanes in the (single) partial row

    def kernel(x_ref, t_ref, o_ref):
        i = pl.program_id(0)  # parallel partial index (per TensorCore)
        j = pl.program_id(1)  # arbitrary streaming index

        @pl.when(j == 0)
        def _():
            o_ref[...] = jnp.zeros_like(o_ref)

        f = _focal_elementwise(x_ref[...], t_ref[...])

        # Logical tile index (NOT the clamped block index from the index_map):
        # tiles at/after the boundary mask out padded / OOB / duplicated data.
        tile_idx = i * steps + j
        needs_mask = (tile_idx + 1) * tile_rows > q_rows

        @pl.when(needs_mask)
        def _():
            row0 = tile_idx * tile_rows
            r = jax.lax.broadcasted_iota(jnp.int32, (tile_rows, LANES), 0) + row0
            c = jax.lax.broadcasted_iota(jnp.int32, (tile_rows, LANES), 1)
            valid = (r < q_rows) | ((r == q_rows) & (c < rem))
            fm = jnp.where(valid, f, 0.0)
            o_ref[...] += fm.reshape(tile_rows // SUBLANES, SUBLANES, LANES).sum(axis=0)

        @pl.when(jnp.logical_not(needs_mask))
        def _():
            # Interior tile: mask-free fold to one vreg (cheap VPU adds).
            o_ref[...] += f.reshape(tile_rows // SUBLANES, SUBLANES, LANES).sum(axis=0)

    return kernel


def _elementwise_kernel(x_ref, t_ref, o_ref):
    o_ref[...] = _focal_elementwise(x_ref[...], t_ref[...]).astype(o_ref.dtype)


def focal_loss_pallas(inputs, targets, reduction="mean"):
    """Focal loss (alpha=1, gamma=3) matching the PyTorch module semantics."""
    assert inputs.shape == targets.shape
    n_valid = inputs.size

    x_flat = jnp.ravel(inputs)   # free bitcast reshape
    t_flat = jnp.ravel(targets)

    rows = pl.cdiv(n_valid, LANES)
    rem = n_valid % LANES
    if rem != 0:
        # Only a <=127-element pad so the slab is (rows, 128); still one XLA
        # copy of each input.
        # TODO(synk): a 1-D BlockSpec path could avoid even this copy.
        pad = LANES - rem
        x_flat = jnp.pad(x_flat, (0, pad))
        t_flat = jnp.pad(t_flat, (0, pad))
    x2d = x_flat.reshape(rows, LANES)
    t2d = t_flat.reshape(rows, LANES)

    tile_rows = min(MAX_TILE_ROWS, _round_up(rows, SUBLANES))
    total_tiles = pl.cdiv(rows, tile_rows)

    if reduction == "none":
        tile_spec = pl.BlockSpec((tile_rows, LANES), lambda i: (i, 0))
        out = pl.pallas_call(
            _elementwise_kernel,
            out_shape=jax.ShapeDtypeStruct((rows, LANES), inputs.dtype),
            grid_spec=pltpu.PrefetchScalarGridSpec(
                num_scalar_prefetch=0,
                grid=(total_tiles,),
                in_specs=[tile_spec, tile_spec],
                out_specs=tile_spec,
            ),
            compiler_params=pltpu.CompilerParams(
                dimension_semantics=("parallel",),
                vmem_limit_bytes=VMEM_LIMIT,
            ),
        )(x2d, t2d)
        if rem == 0:
            return out.reshape(inputs.shape)   # free, no slice copy
        return out.reshape(-1)[:n_valid].reshape(inputs.shape)

    if reduction not in ("mean", "sum"):
        raise ValueError(f"unknown reduction: {reduction!r}")

    # Reduced ('mean' / 'sum') path: 2-D grid (parallel partials x stream).
    num_partials = min(_num_partials(), total_tiles)
    steps = pl.cdiv(total_tiles, num_partials)
    last_tile = total_tiles - 1

    if num_partials * steps == total_tiles:
        in_spec = pl.BlockSpec((tile_rows, LANES), lambda i, j: (i * steps + j, 0))
    else:
        # Clamp the block index instead of padding the input with zero tiles;
        # the in-kernel mask zeroes the duplicated tile's contribution.
        in_spec = pl.BlockSpec(
            (tile_rows, LANES),
            lambda i, j: (jnp.minimum(i * steps + j, last_tile), 0),
        )
    out_spec = pl.BlockSpec((SUBLANES, LANES), lambda i, j: (i, 0))

    partials = pl.pallas_call(
        _make_sum_kernel(n_valid, tile_rows, steps),
        out_shape=jax.ShapeDtypeStruct((num_partials * SUBLANES, LANES), jnp.float32),
        grid_spec=pltpu.PrefetchScalarGridSpec(
            num_scalar_prefetch=0,
            grid=(num_partials, steps),
            in_specs=[in_spec, in_spec],
            out_specs=out_spec,
        ),
        compiler_params=pltpu.CompilerParams(
            dimension_semantics=("parallel", "arbitrary"),
            vmem_limit_bytes=VMEM_LIMIT,
        ),
    )(x2d, t2d)

    total = jnp.sum(partials)
    if reduction == "mean":
        return total / jnp.float32(n_valid)
    return total


def _focal_loss_ref(inputs, targets, reduction="mean"):
    x = inputs.astype(jnp.float32)
    t = targets.astype(jnp.float32)
    bce = jnp.maximum(x, 0.0) - x * t + jnp.log1p(jnp.exp(-jnp.abs(x)))
    pt = jnp.exp(-bce)
    f = ALPHA * (1.0 - pt) ** 3 * bce
    if reduction == "mean":
        return jnp.mean(f)
    if reduction == "sum":
        return jnp.sum(f)
    return f


if __name__ == "__main__":
    key = jax.random.PRNGKey(0)
    k1, k2 = jax.random.split(key)

    # Logits and binary targets, NCHW-shaped like a segmentation head output.
    x = jax.random.normal(k1, (2, 4, 16, 16), dtype=jnp.float32)
    targets = (jax.random.uniform(k2, (2, 4, 16, 16)) > 0.5).astype(jnp.float32)

    # 'mean' (the module default)
    loss_mean = jax.block_until_ready(focal_loss_pallas(x, targets, "mean"))
    ref_mean = _focal_loss_ref(x, targets, "mean")
    assert jnp.allclose(loss_mean, ref_mean, rtol=1e-5, atol=1e-6), (loss_mean, ref_mean)

    # 'sum'
    loss_sum = jax.block_until_ready(focal_loss_pallas(x, targets, "sum"))
    ref_sum = _focal_loss_ref(x, targets, "sum")
    assert jnp.allclose(loss_sum, ref_sum, rtol=1e-5, atol=1e-5), (loss_sum, ref_sum)

    # 'none'
    loss_none = jax.block_until_ready(focal_loss_pallas(x, targets, "none"))
    ref_none = _focal_loss_ref(x, targets, "none")
    assert jnp.allclose(loss_none, ref_none, rtol=1e-5, atol=1e-6)

    # Ragged shape (not a multiple of 128): exercises the boundary-tile mask
    # and the minimal-pad path.
    k3, k4 = jax.random.split(k1)
    xr = jax.random.normal(k3, (2, 3, 16, 11), dtype=jnp.float32)
    tr = (jax.random.uniform(k4, (2, 3, 16, 11)) > 0.5).astype(jnp.float32)
    lm = jax.block_until_ready(focal_loss_pallas(xr, tr, "mean"))
    assert jnp.allclose(lm, _focal_loss_ref(xr, tr, "mean"), rtol=1e-5, atol=1e-6), lm
    ln = jax.block_until_ready(focal_loss_pallas(xr, tr, "none"))
    assert jnp.allclose(ln, _focal_loss_ref(xr, tr, "none"), rtol=1e-5, atol=1e-6)

    print("KERNEL_OK")
</pallas_src>

<mosaic_0001>
module attributes {stable_mosaic.version = 11 : i64} {
  func.func @kernel(%arg0: i32, %arg1: i32, %arg2: memref<16x128xf32, #tpu.memory_space<vmem>>, %arg3: memref<16x128xf32, #tpu.memory_space<vmem>>, %arg4: memref<8x128xf32, #tpu.memory_space<vmem>>) attributes {dimension_semantics = [#tpu.dimension_semantics<parallel>, #tpu.dimension_semantics<arbitrary>], iteration_bounds = array<i64: 1, 1>, scalar_prefetch = 0 : i64, scratch_operands = 0 : i64, tpu.core_type = #tpu.core_type<tc>, window_params = [{transform_indices = @transform_0, window_bounds = array<i64: 16, 128>}, {transform_indices = @transform_1, window_bounds = array<i64: 16, 128>}, {transform_indices = @transform_2, window_bounds = array<i64: 8, 128>}]} {
    %c0_i32 = arith.constant 0 : i32
    %0 = arith.cmpi eq, %arg1, %c0_i32 : i32
    %1 = arith.extui %0 : i1 to i32
    %c0_i32_0 = arith.constant 0 : i32
    %2 = arith.cmpi ne, %1, %c0_i32_0 : i32
    scf.if %2 {
      %cst_12 = arith.constant 0.000000e+00 : f32
      %35 = vector.broadcast %cst_12 : f32 to vector<8x128xf32>
      %c0_13 = arith.constant 0 : index
      %c0_14 = arith.constant 0 : index
      %36 = vector.load %arg4[%c0_13, %c0_14] : memref<8x128xf32, #tpu.memory_space<vmem>>, vector<8x128xf32>
      tpu.vector_store %arg4[%c0_13, %c0_14], %35 {strides = array<i32>} : memref<8x128xf32, #tpu.memory_space<vmem>>, vector<8x128xf32>,
    } else {
    }
    %c0 = arith.constant 0 : index
    %c0_1 = arith.constant 0 : index
    %3 = vector.load %arg2[%c0, %c0_1] : memref<16x128xf32, #tpu.memory_space<vmem>>, vector<16x128xf32>
    %c0_2 = arith.constant 0 : index
    %c0_3 = arith.constant 0 : index
    %4 = vector.load %arg3[%c0_2, %c0_3] : memref<16x128xf32, #tpu.memory_space<vmem>>, vector<16x128xf32>
    %cst = arith.constant 0.000000e+00 : f32
    %5 = vector.broadcast %cst : f32 to vector<16x128xf32>
    %6 = arith.maximumf %3, %5 : vector<16x128xf32>
    %7 = arith.mulf %3, %4 : vector<16x128xf32>
    %8 = arith.subf %6, %7 : vector<16x128xf32>
    %9 = math.absf %3 : vector<16x128xf32>
    %cst_4 = arith.constant 0.000000e+00 : f32
    %10 = vector.broadcast %cst_4 : f32 to vector<16x128xf32>
    %11 = arith.subf %10, %9 : vector<16x128xf32>
    %12 = math.exp %11 : vector<16x128xf32>
    %13 = math.log1p %12 : vector<16x128xf32>
    %14 = arith.addf %8, %13 : vector<16x128xf32>
    %cst_5 = arith.constant 0.000000e+00 : f32
    %15 = vector.broadcast %cst_5 : f32 to vector<16x128xf32>
    %16 = arith.subf %15, %14 : vector<16x128xf32>
    %17 = math.exp %16 : vector<16x128xf32>
    %cst_6 = arith.constant 1.000000e+00 : f32
    %18 = vector.broadcast %cst_6 : f32 to vector<16x128xf32>
    %19 = arith.subf %18, %17 : vector<16x128xf32>
    %20 = arith.mulf %19, %19 : vector<16x128xf32>
    %21 = arith.mulf %20, %19 : vector<16x128xf32>
    %cst_7 = arith.constant 1.000000e+00 : f32
    %22 = vector.broadcast %cst_7 : f32 to vector<16x128xf32>
    %23 = arith.mulf %22, %21 : vector<16x128xf32>
    %24 = arith.mulf %23, %14 : vector<16x128xf32>
    %c1_i32 = arith.constant 1 : i32
    %25 = arith.muli %arg0, %c1_i32 : i32
    %26 = arith.addi %25, %arg1 : i32
    %c1_i32_8 = arith.constant 1 : i32
    %27 = arith.addi %26, %c1_i32_8 : i32
    %c16_i32 = arith.constant 16 : i32
    %28 = arith.muli %27, %c16_i32 : i32
    %c16_i32_9 = arith.constant 16 : i32
    %29 = arith.cmpi sgt, %28, %c16_i32_9 : i32
    %30 = arith.extui %29 : i1 to i32
    %c0_i32_10 = arith.constant 0 : i32
    %31 = arith.cmpi ne, %30, %c0_i32_10 : i32
    scf.if %31 {
      %c16_i32_12 = arith.constant 16 : i32
      %35 = arith.muli %26, %c16_i32_12 : i32
      %36 = tpu.iota {dimensions = array<i32: 0>} : vector<16x128xi32>
      %37 = vector.broadcast %35 : i32 to vector<16x128xi32>
      %38 = arith.addi %36, %37 : vector<16x128xi32>
      %39 = tpu.iota {dimensions = array<i32: 1>} : vector<16x128xi32>
      %c16_i32_13 = arith.constant 16 : i32
      %40 = vector.broadcast %c16_i32_13 : i32 to vector<16x128xi32>
      %41 = arith.cmpi slt, %38, %40 : vector<16x128xi32>
      %c16_i32_14 = arith.constant 16 : i32
      %42 = vector.broadcast %c16_i32_14 : i32 to vector<16x128xi32>
      %43 = arith.cmpi eq, %38, %42 : vector<16x128xi32>
      %c0_i32_15 = arith.constant 0 : i32
      %44 = vector.broadcast %c0_i32_15 : i32 to vector<16x128xi32>
      %45 = arith.cmpi slt, %39, %44 : vector<16x128xi32>
      %46 = arith.andi %43, %45 : vector<16x128xi1>
      %47 = arith.ori %41, %46 : vector<16x128xi1>
      %cst_16 = arith.constant 0.000000e+00 : f32
      %48 = vector.broadcast %cst_16 : f32 to vector<16x128xf32>
      %49 = arith.select %47, %24, %48 : vector<16x128xi1>, vector<16x128xf32>
      %c0_17 = arith.constant 0 : index
      %c0_18 = arith.constant 0 : index
      %50 = vector.load %arg4[%c0_17, %c0_18] : memref<8x128xf32, #tpu.memory_space<vmem>>, vector<8x128xf32>
      %51 = vector.shape_cast %49 : vector<16x128xf32> to vector<2x8x128xf32>
      %cst_19 = arith.constant dense<0.000000e+00> : vector<8x128xf32>
      %52 = vector.multi_reduction <add>, %51, %cst_19 [0] : vector<2x8x128xf32> to vector<8x128xf32>
      %53 = arith.addf %50, %52 : vector<8x128xf32>
      %c0_20 = arith.constant 0 : index
      %c0_21 = arith.constant 0 : index
      %54 = vector.load %arg4[%c0_20, %c0_21] : memref<8x128xf32, #tpu.memory_space<vmem>>, vector<8x128xf32>
      tpu.vector_store %arg4[%c0_20, %c0_21], %53 {strides = array<i32>} : memref<8x128xf32, #tpu.memory_space<vmem>>, vector<8x128xf32>,
    } else {
    }
    %true = arith.constant true
    %32 = arith.xori %29, %true : i1
    %33 = arith.extui %32 : i1 to i32
    %c0_i32_11 = arith.constant 0 : i32
    %34 = arith.cmpi ne, %33, %c0_i32_11 : i32
    scf.if %34 {
      %c0_12 = arith.constant 0 : index
      %c0_13 = arith.constant 0 : index
      %35 = vector.load %arg4[%c0_12, %c0_13] : memref<8x128xf32, #tpu.memory_space<vmem>>, vector<8x128xf32>
      %36 = vector.shape_cast %24 : vector<16x128xf32> to vector<2x8x128xf32>
      %cst_14 = arith.constant dense<0.000000e+00> : vector<8x128xf32>
      %37 = vector.multi_reduction <add>, %36, %cst_14 [0] : vector<2x8x128xf32> to vector<8x128xf32>
      %38 = arith.addf %35, %37 : vector<8x128xf32>
      %c0_15 = arith.constant 0 : index
      %c0_16 = arith.constant 0 : index
      %39 = vector.load %arg4[%c0_15, %c0_16] : memref<8x128xf32, #tpu.memory_space<vmem>>, vector<8x128xf32>
      tpu.vector_store %arg4[%c0_15, %c0_16], %38 {strides = array<i32>} : memref<8x128xf32, #tpu.memory_space<vmem>>, vector<8x128xf32>,
    } else {
    }
    return
  }
  func.func @transform_0(%arg0: i32, %arg1: i32) -> (i32, i32) {
    %c1_i32 = arith.constant 1 : i32
    %0 = arith.muli %arg0, %c1_i32 : i32
    %1 = arith.addi %0, %arg1 : i32
    %c0_i32 = arith.constant 0 : i32
    %c0_i32_0 = arith.constant 0 : i32
    return %1, %c0_i32 : i32, i32
  }
  func.func @transform_1(%arg0: i32, %arg1: i32) -> (i32, i32) {
    %c1_i32 = arith.constant 1 : i32
    %0 = arith.muli %arg0, %c1_i32 : i32
    %1 = arith.addi %0, %arg1 : i32
    %c0_i32 = arith.constant 0 : i32
    %c0_i32_0 = arith.constant 0 : i32
    return %1, %c0_i32 : i32, i32
  }
  func.func @transform_2(%arg0: i32, %arg1: i32) -> (i32, i32) {
    %c0_i32 = arith.constant 0 : i32
    %c0_i32_0 = arith.constant 0 : i32
    return %arg0, %c0_i32 : i32, i32
  }
}

</mosaic_0001>

<bundles_post_ra>
// kernel: tpu_custom_call.1
= control target key start
LH: loop header
LB: loop body
LE: loop exit
PB: predicated region body
PF: predicated region fallthrough
CT: control target
= control target key end

     0   :  { %7 = vsyncpa [#allocation3], 0  ;;  %s295_s0 = inlined_call_operand.hbm [shape: f32[16,128], index: 0, kind: input, shape index: {}]   ;;  %s296_s1 = inlined_call_operand.hbm [shape: f32[16,128], index: 1, kind: input, shape index: {}]   ;;  %s297_s2 = inlined_call_operand.hbm [shape: f32[8,128], index: 2, kind: output, shape index: {}]  }
   0x1   :  { %8 = vsyncpa [#allocation6], 0 }
   0x2   :  { %9 = vsyncpa [#allocation4], 0  ;;  %s18_s11 = sshll.u32 %s295_s0, 4  ;;  %s266_s12 = smov [#allocation2]   ;;  %s19_s11 = int_to_ptr.hbm [resolvable:$true] %s18_s11 }
   0x3   :  { %s20_s13 = sshll.u32 %s266_s12, 4  ;;  %s35_s16 = sshll.u32 %s296_s1, 4  ;;  %s21_s13 = int_to_ptr.vmem [resolvable:$true] %s20_s13  ;;  %s36_s16 = int_to_ptr.hbm [resolvable:$true] %s35_s16 }
   0x4   :  { %s267_s17 = smov 128   ;;  %s268_s18 = smov 8  }
   0x5   :  { %26 = dma.hbm_to_vmem [thread:$0]  %s19_s11, 256, %s21_s13, [#allocation3], %s267_s17, %s267_s17, %s268_s18  }
   0x6   :  { %s269_s19 = smov [#allocation5]  }
   0x7   :  { %s37_s20 = sshll.u32 %s269_s19, 4  ;;  %s38_s20 = int_to_ptr.vmem [resolvable:$true] %s37_s20 }
   0x8   :  { %43 = dma.hbm_to_vmem [thread:$0]  %s36_s16, 256, %s38_s20, [#allocation6], %s267_s17, %s267_s17, %s268_s18  }
   0x9   :  { %260 = dma.done.wait [#allocation3], 256  }
   0xa   :  { %261 = vsyncadd [#allocation3], 4294967040 }
   0xb   :  { %262 = dma.done.wait [#allocation6], 256  }
   0xc   :  { %263 = vsyncadd [#allocation6], 4294967040  ;;  %v61_v0 = vld [vmem:[#allocation2] sm:$0xff]  ;;  %v62_v1 = vld [vmem:[#allocation2 + $0x8] sm:$0xff]  ;;  %s270_s0 = smov [#allocation7]   ;;  %s159_s23 = sshll.u32 %s297_s2, 4  ;;  %s160_s23 = int_to_ptr.hbm [resolvable:$true] %s159_s23 }
   0xd   :  { %v71_v2 = vand.u32 2147483647, %v61_v0  ;;  %v72_v3 = vand.u32 2147483647, %v62_v1  ;;  %v63_v12 = vld [vmem:[#allocation5] sm:$0xff]  ;;  %v64_v15 = vld [vmem:[#allocation5 + $0x8] sm:$0xff] }
   0xe   :  { %v65_v17 = vmax.f32 %v61_v0, 0.0  ;;  %v67_v18 = vmul.f32 %v63_v12, %v61_v0  ;;  %v66_v21 = vmax.f32 %v62_v1, 0.0  ;;  %v68_v22 = vmul.f32 %v64_v15, %v62_v1  ;;  %s157_s1 = sshll.u32 %s270_s0, 4  ;;  %s158_s1 = int_to_ptr.vmem [resolvable:$true] %s157_s1 }
   0xf   :  { %v73_v4 = vsub.f32 0.0, %v71_v2  ;;  %v74_v5 = vsub.f32 0.0, %v72_v3 }
  0x10   :  { %v69_v26 = vsub.f32 %v65_v17, %v67_v18  ;;  %v70_v29 = vsub.f32 %v66_v21, %v68_v22 }
  0x11   :  { %v75_v6 = vmul.f32 1.442695, %v73_v4  ;;  %v77_v7 = vmul.f32 1.442695, %v74_v5 }
  0x13   :  { %176 = vpow2.f32 %v75_v6 }
  0x14   :  { %178 = vpow2.f32 %v77_v7 }
  0x19   :  { %v177_v8 = vpop.eup %176 }
  0x1a   :  { %v179_v9 = vpop.eup %178  ;;  %v79_v10 = vadd.f32 1.0, %v177_v8  ;;  %v82_v11 = vmul.f32 -0.5, %v177_v8  ;;  %v85_v19 = vand.u32 2147483647, %v177_v8 }
  0x1b   :  { %v88_v13 = vadd.f32 1.0, %v179_v9  ;;  %v91_v14 = vmul.f32 -0.5, %v179_v9  ;;  %v94_v23 = vand.u32 2147483647, %v179_v9 }
  0x1c   :  { %180 = vlog2.f32 %v79_v10  ;;  %v83_v16 = vadd.f32 1.0, %v82_v11  ;;  %vm86_vm0 = vcmp.lt.f32.partialorder %v85_v19, 0.0004427343 }
  0x1d   :  { %182 = vlog2.f32 %v88_v13  ;;  %v92_v20 = vadd.f32 1.0, %v91_v14  ;;  %vm95_vm1 = vcmp.lt.f32.partialorder %v94_v23, 0.0004427343 }
  0x1e   :  { %v84_v24 = vmul.f32 %v177_v8, %v83_v16 }
  0x1f   :  { %v93_v27 = vmul.f32 %v179_v9, %v92_v20 }
  0x22   :  { %v181_v25 = vpop.eup %180 }
  0x23   :  { %v183_v28 = vpop.eup %182  ;;  %v81_v30 = vmul.f32 0.6931472, %v181_v25 }
  0x24   :  { %v90_v31 = vmul.f32 0.6931472, %v183_v28 }
  0x25   :  { %v87_v32 = vsel %vm86_vm0, %v84_v24, %v81_v30 }
  0x26   :  { %v96_v33 = vsel %vm95_vm1, %v93_v27, %v90_v31  ;;  %v97_v34 = vadd.f32 %v87_v32, %v69_v26 }
  0x27   :  { %v98_v35 = vadd.f32 %v96_v33, %v70_v29 }
  0x28   :  { %v99_v36 = vsub.f32 0.0, %v97_v34 }
  0x29   :  { %v100_v37 = vsub.f32 0.0, %v98_v35 }
  0x2a   :  { %v101_v38 = vmul.f32 1.442695, %v99_v36 }
  0x2b   :  { %v103_v39 = vmul.f32 1.442695, %v100_v37 }
  0x2c   :  { %184 = vpow2.f32 %v101_v38 }
  0x2d   :  { %186 = vpow2.f32 %v103_v39 }
  0x32   :  { %v185_v40 = vpop.eup %184 }
  0x33   :  { %v187_v41 = vpop.eup %186  ;;  %v105_v42 = vsub.f32 1.0, %v185_v40 }
  0x34   :  { %v106_v43 = vsub.f32 1.0, %v187_v41 }
  0x35   :  { %v107_v44 = vmul.f32 %v105_v42, %v105_v42 }
  0x36   :  { %v108_v45 = vmul.f32 %v106_v43, %v106_v43 }
  0x37   :  { %v109_v46 = vmul.f32 %v107_v44, %v105_v42 }
  0x38   :  { %v110_v47 = vmul.f32 %v108_v45, %v106_v43 }
  0x39   :  { %v111_v48 = vmul.f32 %v109_v46, %v97_v34 }
  0x3a   :  { %v112_v49 = vmul.f32 %v110_v47, %v98_v35 }
  0x3c   :  { %v149_v50 = vadd.f32 %v112_v49, %v111_v48 }
  0x3e   :  { %151 = vst [vmem:[#allocation7] sm:$0xff] %v149_v50 }
  0x3f   :  { %162 = dma.vmem_to_hbm [thread:$0]  %s158_s1, 128, %s160_s23, [#allocation4]  }
  0x40   :  { %264 = dma.done.wait [#allocation4], 128  }
  0x41   :  { %265 = vsyncadd [#allocation4], 4294967168 }
  0x42   :  { %167 = vsyncpa [#allocation3], 1 }
  0x43   :  { %168 = vsyncpa [#allocation6], 1 }
  0x44   :  { %169 = vsyncpa [#allocation4], 1 }

</bundles_post_ra>
